<compile_context>
chip_gen: v7x
topology: tpu7x:2x2x1
jax: 0.10.0
libtpu: 0.0.40
codegen_flags: <defaults>
</compile_context>

<pallas_src>
import math

import jax
import jax.numpy as jnp
from jax.experimental import pallas as pl
from jax.experimental.pallas import tpu as pltpu


def _sub_kernel(x_ref, o_ref, out_ref):
    # Pure VPU elementwise subtract. Mixed dtypes are promoted in-kernel
    # (VPU casts are free relative to HBM BW) and numpy broadcasting handles
    # shape mismatches (e.g. a (1,1) scalar operand vs a (rows, lanes) tile).
    out_ref[...] = (x_ref[...] - o_ref[...]).astype(out_ref.dtype)


# Below this many output bytes: single full-array block (launch overhead
# dominates; pipelining does not pay).
_SMALL_BYTES = 512 * 1024
# Per-buffer block target for the tiled path (~2 MiB for f32): 3 streams x
# 2 buffers x 2 MiB = 12 MiB double-buffered working set.
_TARGET_BLOCK_BYTES = 2 * 1024 * 1024
_VMEM_LIMIT = 32 * 1024 * 1024


def _block_rows(rows: int, lanes: int) -> int:
    # ~2 MiB/buffer (f32), clamped so the grid keeps >= 4 steps (v7x shards
    # the "parallel" axis across both TensorCores). Multiple of 32 sublanes
    # keeps f32/bf16/int8 tilings all legal.
    target = max(32, (_TARGET_BLOCK_BYTES // (4 * lanes)) // 32 * 32)
    quarter = max(32, (rows // 4) // 32 * 32)
    return min(target, quarter)


def _sub_small(x, o, out_shape, out_dtype):
    """Single-block path: whole operands resident in VMEM, one grid step."""
    total = math.prod(out_shape)
    if x.shape == o.shape == tuple(out_shape) and total >= 128 and total % 128 == 0:
        # Lane-dense slab: e.g. (2,4,16,16) -> (16, 128). Reshape of
        # contiguous data is metadata-only (free).
        rows = total // 128
        out2 = pl.pallas_call(
            _sub_kernel,
            out_shape=jax.ShapeDtypeStruct((rows, 128), out_dtype),
        )(jnp.reshape(x, (rows, 128)), jnp.reshape(o, (rows, 128)))
        return jnp.reshape(out2, out_shape)

    # Generic small case (possibly broadcasting): rank-equalize with leading
    # size-1 dims (free) and let in-kernel broadcasting do the rest — the
    # broadcast is never materialized in HBM.
    rank = max(len(out_shape), 2)
    inner_out = (1,) * (rank - len(out_shape)) + tuple(out_shape)

    def lift(a):
        if a.ndim < rank:
            return jnp.reshape(a, (1,) * (rank - a.ndim) + a.shape)
        return a

    out = pl.pallas_call(
        _sub_kernel,
        out_shape=jax.ShapeDtypeStruct(inner_out, out_dtype),
    )(lift(x), lift(o))
    return jnp.reshape(out, out_shape)


def _sub_tiled(x, o, out_shape, out_dtype):
    """Pipelined path: lane-dense (rows, lanes) slabs, ~2 MiB blocks, pad-free
    ragged last block (Pallas masks OOB writes; garbage OOB reads are harmless
    for an elementwise op)."""
    total = math.prod(out_shape)

    lanes = next((l for l in (512, 256, 128) if total % l == 0), None)
    padded = False
    if lanes is None:
        # TODO(synk): totals not divisible by 128 still take a small tail-pad
        # copy + slice; rare for this module's usage.
        lanes = 128
        padded = True
    pad = (-total) % lanes
    rows = (total + pad) // lanes
    block_rows = _block_rows(rows, lanes)

    def prep(a):
        if a.size == 1:
            # Scalar-like operand: keep a (1,1) block resident and broadcast
            # in-kernel instead of materializing it to out_shape in HBM.
            return jnp.reshape(a, (1, 1)), pl.BlockSpec((1, 1), lambda i: (0, 0))
        if a.shape != tuple(out_shape):
            # TODO(synk): non-scalar large-broadcast still materializes the
            # broadcast before tiling (rare for this module's usage).
            a = jnp.broadcast_to(a, out_shape)
        flat = jnp.reshape(a, (-1,))
        if padded:
            flat = jnp.pad(flat, (0, pad))
        a2 = jnp.reshape(flat, (rows, lanes))
        return a2, pl.BlockSpec((block_rows, lanes), lambda i: (i, 0))

    x2, x_spec = prep(x)
    o2, o_spec = prep(o)

    out_bytes_pallas = rows * lanes * jnp.dtype(out_dtype).itemsize
    bytes_accessed = (x2.size * x2.dtype.itemsize
                      + o2.size * o2.dtype.itemsize
                      + out_bytes_pallas)

    out2 = pl.pallas_call(
        _sub_kernel,
        out_shape=jax.ShapeDtypeStruct((rows, lanes), out_dtype),
        grid_spec=pl.GridSpec(
            grid=(pl.cdiv(rows, block_rows),),
            in_specs=[x_spec, o_spec],
            out_specs=pl.BlockSpec((block_rows, lanes), lambda i: (i, 0)),
        ),
        compiler_params=pltpu.CompilerParams(
            dimension_semantics=("parallel",),
            vmem_limit_bytes=_VMEM_LIMIT,
        ),
        cost_estimate=pl.CostEstimate(
            flops=rows * lanes,
            transcendentals=0,
            bytes_accessed=bytes_accessed,
        ),
    )(x2, o2)

    out_flat = jnp.reshape(out2, (-1,))
    if padded:
        out_flat = out_flat[:total]
    return jnp.reshape(out_flat, out_shape)


def subtraction_arch_core(x: jax.Array, o: jax.Array) -> jax.Array:
    """Forward of SubtractionArchCore: x - o with broadcasting semantics."""
    x = jnp.asarray(x)
    o = jnp.asarray(o)
    out_shape = jnp.broadcast_shapes(x.shape, o.shape)
    out_dtype = jnp.result_type(x.dtype, o.dtype)
    total = math.prod(out_shape)

    if total == 0:
        return jnp.zeros(out_shape, out_dtype)

    out_bytes = total * jnp.dtype(out_dtype).itemsize
    if out_bytes <= _SMALL_BYTES:
        return _sub_small(x, o, out_shape, out_dtype)
    return _sub_tiled(x, o, out_shape, out_dtype)


if __name__ == "__main__":
    key = jax.random.PRNGKey(0)
    kx, ko = jax.random.split(key)
    # NCHW shapes matching the PyTorch module usage (batch=2, channels=4, 16x16).
    x = jax.random.normal(kx, (2, 4, 16, 16), dtype=jnp.float32)
    o = jax.random.normal(ko, (2, 4, 16, 16), dtype=jnp.float32)

    out = jax.block_until_ready(subtraction_arch_core(x, o))

    ref = x - o
    assert out.shape == ref.shape
    assert out.dtype == ref.dtype
    assert jnp.allclose(out, ref, atol=1e-6, rtol=1e-6)
    print("KERNEL_OK")
</pallas_src>

<mosaic_0001>
module attributes {stable_mosaic.version = 11 : i64} {
  func.func @_sub_kernel(%arg0: memref<16x128xf32, #tpu.memory_space<vmem>>, %arg1: memref<16x128xf32, #tpu.memory_space<vmem>>, %arg2: memref<16x128xf32, #tpu.memory_space<vmem>>) attributes {dimension_semantics = [], scalar_prefetch = 0 : i64, scratch_operands = 0 : i64, tpu.core_type = #tpu.core_type<tc>} {
    %c0 = arith.constant 0 : index
    %c0_0 = arith.constant 0 : index
    %0 = vector.load %arg0[%c0, %c0_0] : memref<16x128xf32, #tpu.memory_space<vmem>>, vector<16x128xf32>
    %c0_1 = arith.constant 0 : index
    %c0_2 = arith.constant 0 : index
    %1 = vector.load %arg1[%c0_1, %c0_2] : memref<16x128xf32, #tpu.memory_space<vmem>>, vector<16x128xf32>
    %2 = arith.subf %0, %1 : vector<16x128xf32>
    %c0_3 = arith.constant 0 : index
    %c0_4 = arith.constant 0 : index
    %3 = vector.load %arg2[%c0_3, %c0_4] : memref<16x128xf32, #tpu.memory_space<vmem>>, vector<16x128xf32>
    tpu.vector_store %arg2[%c0_3, %c0_4], %2 {strides = array<i32>} : memref<16x128xf32, #tpu.memory_space<vmem>>, vector<16x128xf32>,
    return
  }
}

</mosaic_0001>

<bundles_post_ra>
// kernel: tpu_custom_call.1
= control target key start
LH: loop header
LB: loop body
LE: loop exit
PB: predicated region body
PF: predicated region fallthrough
CT: control target
= control target key end

     0   :  { %7 = vsyncpa [#allocation3], 0  ;;  %s208_s0 = inlined_call_operand.hbm [shape: f32[16,128], index: 0, kind: input, shape index: {}]   ;;  %s209_s1 = inlined_call_operand.hbm [shape: f32[16,128], index: 1, kind: input, shape index: {}]   ;;  %s210_s2 = inlined_call_operand.hbm [shape: f32[16,128], index: 2, kind: output, shape index: {}]  }
   0x1   :  { %8 = vsyncpa [#allocation6], 0 }
   0x2   :  { %9 = vsyncpa [#allocation4], 0  ;;  %s143_s9 = smov [#allocation2]   ;;  %s71_s13 = scalar_lea.hbm %s208_s0, 256 }
   0x3   :  { %s15_s10 = sshll.u32 %s143_s9, 4  ;;  %p72_p0 = scmp.ne.s32.totalorder %s208_s0, %s71_s13  ;;  %s16_s10 = int_to_ptr.vmem [resolvable:$true] %s15_s10 }
   0x4   :  { %p75_p1 = scmp.lt.u32.totalorder %s71_s13, %s208_s0 }
   0x6   :  { %p77_p2 = pnand %p75_p1, %p72_p0 }
   0x8   :  { %80 = shalt.err (!%p77_p2)
}
   0x9   :  { %s81_s18 = scalar_lea.vmem %s16_s10, 256  ;;  %p86_p4 = scmp.lt.s32.totalorder %s16_s10, %s16_s10 }
   0xa   :  { %p82_p3 = scmp.ne.s32.totalorder %s16_s10, %s81_s18  ;;  %p87_p5 = scmp.lt.s32.totalorder %s81_s18, %s81_s18 }
   0xc   :  { %p88_p6 = por %p87_p5, %p86_p4 }
   0xe   :  { %p89_p7 = pnand %p88_p6, %p82_p3 }
  0x10   :  { %92 = shalt.err (!%p89_p7)
}
  0x11   :  { %s144_s19 = smov 128   ;;  %s145_s20 = smov 8  }
  0x12   :  { %21 = dma.hbm_to_vmem [thread:$0]  %s208_s0, 256, %s16_s10, [#allocation3], %s144_s19, %s144_s19, %s145_s20  }
  0x13   :  { %s146_s23 = smov [#allocation5]   ;;  %s93_s27 = scalar_lea.hbm %s209_s1, 256 }
  0x14   :  { %s27_s24 = sshll.u32 %s146_s23, 4  ;;  %p94_p8 = scmp.ne.s32.totalorder %s209_s1, %s93_s27  ;;  %s28_s24 = int_to_ptr.vmem [resolvable:$true] %s27_s24 }
  0x15   :  { %p97_p9 = scmp.lt.u32.totalorder %s93_s27, %s209_s1 }
  0x17   :  { %p99_p10 = pnand %p97_p9, %p94_p8 }
  0x19   :  { %102 = shalt.err (!%p99_p10)
}
  0x1a   :  { %s103_s4 = scalar_lea.vmem %s28_s24, 256  ;;  %p108_p12 = scmp.lt.s32.totalorder %s28_s24, %s28_s24 }
  0x1b   :  { %p104_p11 = scmp.ne.s32.totalorder %s28_s24, %s103_s4  ;;  %p109_p13 = scmp.lt.s32.totalorder %s103_s4, %s103_s4 }
  0x1d   :  { %p110_p0 = por %p109_p13, %p108_p12 }
  0x1f   :  { %p111_p1 = pnand %p110_p0, %p104_p11 }
  0x21   :  { %114 = shalt.err (!%p111_p1)
}
  0x22   :  { %33 = dma.hbm_to_vmem [thread:$0]  %s209_s1, 256, %s28_s24, [#allocation6], %s144_s19, %s144_s19, %s145_s20  }
  0x23   :  { %137 = dma.done.wait [#allocation3], 256  }
  0x24   :  { %138 = vsyncadd [#allocation3], 4294967040 }
  0x25   :  { %139 = dma.done.wait [#allocation6], 256  }
  0x26   :  { %140 = vsyncadd [#allocation6], 4294967040  ;;  %s147_s6 = smov [#allocation7]   ;;  %v40_v0 = vld [vmem:[#allocation2] sm:$0xff]  ;;  %v42_v1 = vld [vmem:[#allocation5] sm:$0xff] }
  0x27   :  { %s53_s7 = sshll.u32 %s147_s6, 4  ;;  %v41_v2 = vld [vmem:[#allocation2 + $0x8] sm:$0xff]  ;;  %v44_v3 = vsub.f32 %v40_v0, %v42_v1  ;;  %v43_v4 = vld [vmem:[#allocation5 + $0x8] sm:$0xff]  ;;  %s54_s7 = int_to_ptr.vmem [resolvable:$true] %s53_s7 }
  0x28   :  { %v45_v5 = vsub.f32 %v41_v2, %v43_v4  ;;  %s115_s8 = scalar_lea.vmem %s54_s7, 256  ;;  %p120_p3 = scmp.lt.s32.totalorder %s54_s7, %s54_s7 }
  0x29   :  { %46 = vst [vmem:[#allocation7] sm:$0xff] %v44_v3  ;;  %p116_p2 = scmp.ne.s32.totalorder %s54_s7, %s115_s8  ;;  %p121_p4 = scmp.lt.s32.totalorder %s115_s8, %s115_s8 }
  0x2a   :  { %47 = vst [vmem:[#allocation7 + $0x8] sm:$0xff] %v45_v5 }
  0x2b   :  { %p122_p5 = por %p121_p4, %p120_p3 }
  0x2d   :  { %p123_p6 = pnand %p122_p5, %p116_p2 }
  0x2f   :  { %126 = shalt.err (!%p123_p6)
}
  0x30   :  { %s127_s10 = scalar_lea.hbm %s210_s2, 256 }
  0x31   :  { %p128_p7 = scmp.ne.s32.totalorder %s210_s2, %s127_s10  ;;  %p131_p8 = scmp.lt.u32.totalorder %s127_s10, %s210_s2 }
  0x33   :  { %p133_p9 = pnand %p131_p8, %p128_p7 }
  0x35   :  { %136 = shalt.err (!%p133_p9)
}
  0x36   :  { %59 = dma.vmem_to_hbm [thread:$0]  %s54_s7, 256, %s210_s2, [#allocation4], %s144_s19, %s144_s19, %s145_s20  }
  0x37   :  { %141 = dma.done.wait [#allocation4], 256  }
  0x38   :  { %142 = vsyncadd [#allocation4], 4294967040 }
  0x39   :  { %63 = vsyncpa [#allocation3], 1 }
  0x3a   :  { %64 = vsyncpa [#allocation6], 1 }
  0x3b   :  { %65 = vsyncpa [#allocation4], 1 }

</bundles_post_ra>
